<compile_context>
chip_gen: v6e
topology: v6e:2x2x1
jax: 0.10.0
libtpu: 0.0.40
codegen_flags: <defaults>
</compile_context>

<pallas_src>
import functools

import jax
import jax.numpy as jnp
import numpy as np
from jax.experimental import pallas as pl
from jax.experimental.pallas import tpu as pltpu


def _round_up(x: int, m: int) -> int:
    return ((x + m - 1) // m) * m


def _vmem_estimate_bytes(tile: int, nbit: int, c: int) -> int:
    """Conservative VMEM estimate: double-buffered blocks + live f32 temporaries."""
    nbit_p = _round_up(nbit, 128)
    c_p = _round_up(c, 128)
    # double-buffered pipeline blocks: feature, predict, tgt(1 lane pad), out(1 lane pad)
    blocks = 2 * tile * (nbit_p + c_p + 128 + 128) * 4
    # resident proxies (still double-buffered by the pipeline machinery)
    blocks += 2 * _round_up(c, 8) * nbit_p * 4
    # live temporaries: ~8 x (tile, C) f32 + ~3 x (tile, nbit) f32
    temps = (8 * tile * c_p + 3 * tile * nbit_p) * 4
    return blocks + temps


def _pick_tile(n: int, nbit: int, c: int, max_row_tile: int) -> int:
    tile = _round_up(min(max_row_tile, _round_up(n, 8)), 8)
    budget = 40 * (1 << 20)  # headroom under v7x's 64 MiB physical VMEM
    while tile > 8 and _vmem_estimate_bytes(tile, nbit, c) > budget:
        tile = _round_up(tile // 2, 8)
    return tile


def _classone_rows_kernel(feat_ref, prox_ref, pred_ref, tgt_ref, rows_ref, *,
                          n_true, tile_rows, masked, mxu_bf16):
    eps = 1e-12
    mrg = 1.0
    i = pl.program_id(0)

    f = feat_ref[...].astype(jnp.float32)        # (tN, nbit)
    p = prox_ref[...].astype(jnp.float32)        # (C, nbit)
    logits = pred_ref[...].astype(jnp.float32)   # (tN, C)
    tgt = tgt_ref[...]                           # (tN, 1) int32

    # F.normalize(x, p=2, dim=-1) == x * rsqrt(max(sum(x^2), eps^2))
    f_n = f * jax.lax.rsqrt(
        jnp.maximum(jnp.sum(f * f, axis=-1, keepdims=True), eps * eps))
    p_n = p * jax.lax.rsqrt(
        jnp.maximum(jnp.sum(p * p, axis=-1, keepdims=True), eps * eps))

    if mxu_bf16:  # static flag: bf16 MXU operands, f32 accumulation
        f_n = f_n.astype(jnp.bfloat16)
        p_n = p_n.astype(jnp.bfloat16)

    # cdist(f_n, p_n)^2 for unit vectors == 2 - 2 * f_n . p_n
    # (transpose-B contraction on the MXU, no explicit relayout).
    cross = jax.lax.dot_general(
        f_n, p_n,
        dimension_numbers=(((1,), (1,)), ((), ())),
        preferred_element_type=jnp.float32)                      # (tN, C)
    D = jnp.maximum(2.0 - 2.0 * cross, 0.0)

    tn, c = D.shape
    col = jax.lax.broadcasted_iota(jnp.int32, (tn, c), 1)
    onehot = (col == tgt).astype(jnp.float32)                    # one-hot target mask

    # margin add at the label position (labels are one-hot)
    D = D + onehot * mrg

    # p_loss row: sum(-label * log_softmax(-D, 1)) == D[tgt] + lse(-D)
    negD = -D
    m = jnp.max(negD, axis=-1, keepdims=True)
    lse = m + jnp.log(jnp.sum(jnp.exp(negD - m), axis=-1, keepdims=True))
    p_loss_rows = jnp.sum(onehot * D, axis=-1, keepdims=True) + lse   # (tN, 1)

    # d_loss row: cross_entropy(predict, tgt) == lse(logits) - logits[tgt]
    ml = jnp.max(logits, axis=-1, keepdims=True)
    lse2 = ml + jnp.log(jnp.sum(jnp.exp(logits - ml), axis=-1, keepdims=True))
    d_loss_rows = lse2 - jnp.sum(onehot * logits, axis=-1, keepdims=True)  # (tN, 1)

    rows = p_loss_rows + d_loss_rows
    if masked:  # static: only traced when N is not a multiple of tile_rows
        row_id = jax.lax.broadcasted_iota(jnp.int32, (tn, 1), 0) + i * tile_rows
        rows = jnp.where(row_id < n_true, rows, 0.0)

    rows_ref[...] = rows


def classone_loss_from_targets(feature, proxies, predict, targets, *,
                               max_row_tile=1024, mxu_bf16=True):
    """targets: (N,) int32 class indices (== argmax of the one-hot label)."""
    n, nbit = feature.shape
    c, _ = proxies.shape

    tile_rows = _pick_tile(n, nbit, c, max_row_tile)
    grid = pl.cdiv(n, tile_rows)
    masked = (n % tile_rows) != 0

    est = _vmem_estimate_bytes(tile_rows, nbit, c)
    vmem_limit = int(min(max(2 * est, 32 * (1 << 20)), 64 * (1 << 20)))

    tgt2d = targets.astype(jnp.int32).reshape(n, 1)

    kernel = functools.partial(
        _classone_rows_kernel,
        n_true=n, tile_rows=tile_rows, masked=masked, mxu_bf16=mxu_bf16)

    rows = pl.pallas_call(
        kernel,
        out_shape=jax.ShapeDtypeStruct((n, 1), jnp.float32),
        grid_spec=pltpu.PrefetchScalarGridSpec(
            num_scalar_prefetch=0,
            grid=(grid,),
            in_specs=[
                pl.BlockSpec((tile_rows, nbit), lambda i: (i, 0)),  # feature tile
                pl.BlockSpec((c, nbit), lambda i: (0, 0)),           # proxies resident
                pl.BlockSpec((tile_rows, c), lambda i: (i, 0)),      # predict tile
                pl.BlockSpec((tile_rows, 1), lambda i: (i, 0)),      # target idx tile
            ],
            out_specs=pl.BlockSpec((tile_rows, 1), lambda i: (i, 0)),
        ),
        compiler_params=pltpu.CompilerParams(
            dimension_semantics=("parallel",),   # each tile independent -> v7x 2 TCs
            vmem_limit_bytes=vmem_limit,
        ),
    )(feature, proxies, predict, tgt2d)

    # loss = mean over the true batch of (p_loss_row + d_loss_row)
    return jnp.sum(rows) * (1.0 / n)


def classone_loss(feature, proxies, label, predict, **kwargs):
    """One-hot convenience wrapper matching the PyTorch forward signature."""
    targets = jnp.argmax(label, axis=-1).astype(jnp.int32)
    return classone_loss_from_targets(feature, proxies, predict, targets, **kwargs)


def classone_loss_ref(feature, proxies, label, predict):
    """Pure-JAX reference mirroring the PyTorch forward."""
    eps = 1e-12
    f_n = feature / jnp.maximum(jnp.linalg.norm(feature, axis=-1, keepdims=True), eps)
    p_n = proxies / jnp.maximum(jnp.linalg.norm(proxies, axis=-1, keepdims=True), eps)
    D = jnp.sum((f_n[:, None, :] - p_n[None, :, :]) ** 2, axis=-1)
    D = D + jnp.where(label == 1.0, 1.0, 0.0)
    log_sm = jax.nn.log_softmax(-D, axis=1)
    p_loss = jnp.mean(jnp.sum(-label * log_sm, axis=-1))
    tgt = jnp.argmax(label, axis=-1)
    d_loss = jnp.mean(
        jax.nn.logsumexp(predict, axis=-1)
        - jnp.take_along_axis(predict, tgt[:, None], axis=-1)[:, 0]
    )
    return p_loss + d_loss


if __name__ == "__main__":
    N, CLASSES, NBIT = 8, 16, 32

    key = jax.random.PRNGKey(0)
    k_feat, k_pred, k_lab, k_prox = jax.random.split(key, 4)

    # deterministic "parameter" init: randn(classes, nbit) / 8
    proxies = jax.random.normal(k_prox, (CLASSES, NBIT), dtype=jnp.float32) / 8.0

    feature = jax.random.normal(k_feat, (N, NBIT), dtype=jnp.float32)
    predict = jax.random.normal(k_pred, (N, CLASSES), dtype=jnp.float32)
    tgt_idx = jax.random.randint(k_lab, (N,), 0, CLASSES)
    label = jax.nn.one_hot(tgt_idx, CLASSES, dtype=jnp.float32)

    loss_ref = jax.block_until_ready(
        classone_loss_ref(feature, proxies, label, predict))

    # exact f32 MXU path: tight tolerance
    loss_f32 = jax.block_until_ready(
        classone_loss(feature, proxies, label, predict, mxu_bf16=False))
    np.testing.assert_allclose(np.asarray(loss_f32), np.asarray(loss_ref),
                               rtol=1e-5, atol=1e-5)

    # default bf16 MXU path (production config): looser tolerance from bf16 operands
    loss_bf16 = jax.block_until_ready(
        classone_loss(feature, proxies, label, predict))
    np.testing.assert_allclose(np.asarray(loss_bf16), np.asarray(loss_ref),
                               rtol=2e-2, atol=2e-2)

    print("KERNEL_OK")
</pallas_src>

<mosaic_0001>
module attributes {stable_mosaic.version = 11 : i64} {
  func.func @_classone_rows_kernel(%arg0: i32, %arg1: memref<8x32xf32, #tpu.memory_space<vmem>>, %arg2: memref<16x32xf32, #tpu.memory_space<vmem>>, %arg3: memref<8x16xf32, #tpu.memory_space<vmem>>, %arg4: memref<8x1xi32, #tpu.memory_space<vmem>>, %arg5: memref<8x1xf32, #tpu.memory_space<vmem>>) attributes {dimension_semantics = [#tpu.dimension_semantics<parallel>], iteration_bounds = array<i64: 1>, scalar_prefetch = 0 : i64, scratch_operands = 0 : i64, tpu.core_type = #tpu.core_type<tc>, window_params = [{transform_indices = @transform_0, window_bounds = array<i64: 8, 32>}, {pipeline_mode = #tpu.pipeline_mode<synchronous>, transform_indices = @transform_1, window_bounds = array<i64: 16, 32>}, {transform_indices = @transform_2, window_bounds = array<i64: 8, 16>}, {transform_indices = @transform_3, window_bounds = array<i64: 8, 1>}, {transform_indices = @transform_4, window_bounds = array<i64: 8, 1>}]} {
    %c0 = arith.constant 0 : index
    %c0_0 = arith.constant 0 : index
    %0 = vector.load %arg1[%c0, %c0_0] : memref<8x32xf32, #tpu.memory_space<vmem>>, vector<8x32xf32>
    %c0_1 = arith.constant 0 : index
    %c0_2 = arith.constant 0 : index
    %1 = vector.load %arg2[%c0_1, %c0_2] : memref<16x32xf32, #tpu.memory_space<vmem>>, vector<16x32xf32>
    %c0_3 = arith.constant 0 : index
    %c0_4 = arith.constant 0 : index
    %2 = vector.load %arg3[%c0_3, %c0_4] : memref<8x16xf32, #tpu.memory_space<vmem>>, vector<8x16xf32>
    %c0_5 = arith.constant 0 : index
    %c0_6 = arith.constant 0 : index
    %3 = vector.load %arg4[%c0_5, %c0_6] : memref<8x1xi32, #tpu.memory_space<vmem>>, vector<8x1xi32>
    %4 = arith.mulf %0, %0 : vector<8x32xf32>
    %cst = arith.constant dense<0.000000e+00> : vector<8xf32>
    %5 = vector.multi_reduction <add>, %4, %cst [1] : vector<8x32xf32> to vector<8xf32>
    %6 = vector.shape_cast %5 : vector<8xf32> to vector<8x1xf32>
    %cst_7 = arith.constant 1.000000e-24 : f32
    %7 = vector.broadcast %cst_7 : f32 to vector<8x1xf32>
    %8 = arith.maximumf %6, %7 : vector<8x1xf32>
    %9 = math.rsqrt %8 : vector<8x1xf32>
    %10 = vector.broadcast %9 : vector<8x1xf32> to vector<8x32xf32>
    %11 = arith.mulf %0, %10 : vector<8x32xf32>
    %12 = arith.mulf %1, %1 : vector<16x32xf32>
    %cst_8 = arith.constant dense<0.000000e+00> : vector<16xf32>
    %13 = vector.multi_reduction <add>, %12, %cst_8 [1] : vector<16x32xf32> to vector<16xf32>
    %14 = vector.shape_cast %13 : vector<16xf32> to vector<16x1xf32>
    %cst_9 = arith.constant 1.000000e-24 : f32
    %15 = vector.broadcast %cst_9 : f32 to vector<16x1xf32>
    %16 = arith.maximumf %14, %15 : vector<16x1xf32>
    %17 = math.rsqrt %16 : vector<16x1xf32>
    %18 = vector.broadcast %17 : vector<16x1xf32> to vector<16x32xf32>
    %19 = arith.mulf %1, %18 : vector<16x32xf32>
    %cst_10 = arith.constant dense<0.000000e+00> : vector<8x16xf32>
    %20 = tpu.matmul %11, %19, %cst_10 {dimension_numbers = #tpu.dot_dimension_numbers<[1], [1], [0], [0], [0, 0, 1, 0], [], []>} : vector<8x32xf32>, vector<16x32xf32>, vector<8x16xf32> -> vector<8x16xf32>
    %cst_11 = arith.constant 2.000000e+00 : f32
    %21 = vector.broadcast %cst_11 : f32 to vector<8x16xf32>
    %22 = arith.mulf %21, %20 : vector<8x16xf32>
    %cst_12 = arith.constant 2.000000e+00 : f32
    %23 = vector.broadcast %cst_12 : f32 to vector<8x16xf32>
    %24 = arith.subf %23, %22 : vector<8x16xf32>
    %cst_13 = arith.constant 0.000000e+00 : f32
    %25 = vector.broadcast %cst_13 : f32 to vector<8x16xf32>
    %26 = arith.maximumf %24, %25 : vector<8x16xf32>
    %27 = tpu.iota {dimensions = array<i32: 1>} : vector<8x16xi32>
    %28 = vector.broadcast %3 : vector<8x1xi32> to vector<8x16xi32>
    %29 = arith.cmpi eq, %27, %28 : vector<8x16xi32>
    %30 = arith.extui %29 : vector<8x16xi1> to vector<8x16xi32>
    %31 = arith.sitofp %30 : vector<8x16xi32> to vector<8x16xf32>
    %cst_14 = arith.constant 1.000000e+00 : f32
    %32 = vector.broadcast %cst_14 : f32 to vector<8x16xf32>
    %33 = arith.mulf %31, %32 : vector<8x16xf32>
    %34 = arith.addf %26, %33 : vector<8x16xf32>
    %cst_15 = arith.constant 0.000000e+00 : f32
    %35 = vector.broadcast %cst_15 : f32 to vector<8x16xf32>
    %36 = arith.subf %35, %34 : vector<8x16xf32>
    %cst_16 = arith.constant dense<0xFF800000> : vector<8xf32>
    %37 = vector.multi_reduction <maximumf>, %36, %cst_16 [1] : vector<8x16xf32> to vector<8xf32>
    %38 = vector.shape_cast %37 : vector<8xf32> to vector<8x1xf32>
    %39 = vector.broadcast %38 : vector<8x1xf32> to vector<8x16xf32>
    %40 = arith.subf %36, %39 : vector<8x16xf32>
    %41 = math.exp %40 : vector<8x16xf32>
    %cst_17 = arith.constant dense<0.000000e+00> : vector<8xf32>
    %42 = vector.multi_reduction <add>, %41, %cst_17 [1] : vector<8x16xf32> to vector<8xf32>
    %43 = vector.shape_cast %42 : vector<8xf32> to vector<8x1xf32>
    %44 = math.log %43 : vector<8x1xf32>
    %45 = arith.addf %38, %44 : vector<8x1xf32>
    %46 = arith.mulf %31, %34 : vector<8x16xf32>
    %cst_18 = arith.constant dense<0.000000e+00> : vector<8xf32>
    %47 = vector.multi_reduction <add>, %46, %cst_18 [1] : vector<8x16xf32> to vector<8xf32>
    %48 = vector.shape_cast %47 : vector<8xf32> to vector<8x1xf32>
    %49 = arith.addf %48, %45 : vector<8x1xf32>
    %cst_19 = arith.constant dense<0xFF800000> : vector<8xf32>
    %50 = vector.multi_reduction <maximumf>, %2, %cst_19 [1] : vector<8x16xf32> to vector<8xf32>
    %51 = vector.shape_cast %50 : vector<8xf32> to vector<8x1xf32>
    %52 = vector.broadcast %51 : vector<8x1xf32> to vector<8x16xf32>
    %53 = arith.subf %2, %52 : vector<8x16xf32>
    %54 = math.exp %53 : vector<8x16xf32>
    %cst_20 = arith.constant dense<0.000000e+00> : vector<8xf32>
    %55 = vector.multi_reduction <add>, %54, %cst_20 [1] : vector<8x16xf32> to vector<8xf32>
    %56 = vector.shape_cast %55 : vector<8xf32> to vector<8x1xf32>
    %57 = math.log %56 : vector<8x1xf32>
    %58 = arith.addf %51, %57 : vector<8x1xf32>
    %59 = arith.mulf %31, %2 : vector<8x16xf32>
    %cst_21 = arith.constant dense<0.000000e+00> : vector<8xf32>
    %60 = vector.multi_reduction <add>, %59, %cst_21 [1] : vector<8x16xf32> to vector<8xf32>
    %61 = vector.shape_cast %60 : vector<8xf32> to vector<8x1xf32>
    %62 = arith.subf %58, %61 : vector<8x1xf32>
    %63 = arith.addf %49, %62 : vector<8x1xf32>
    %c0_22 = arith.constant 0 : index
    %c0_23 = arith.constant 0 : index
    %64 = vector.load %arg5[%c0_22, %c0_23] : memref<8x1xf32, #tpu.memory_space<vmem>>, vector<8x1xf32>
    tpu.vector_store %arg5[%c0_22, %c0_23], %63 {strides = array<i32>} : memref<8x1xf32, #tpu.memory_space<vmem>>, vector<8x1xf32>,
    return
  }
  func.func @transform_0(%arg0: i32) -> (i32, i32) {
    %c0_i32 = arith.constant 0 : i32
    %c0_i32_0 = arith.constant 0 : i32
    return %arg0, %c0_i32 : i32, i32
  }
  func.func @transform_1(%arg0: i32) -> (i32, i32) {
    %c0_i32 = arith.constant 0 : i32
    %c0_i32_0 = arith.constant 0 : i32
    %c0_i32_1 = arith.constant 0 : i32
    return %c0_i32, %c0_i32_0 : i32, i32
  }
  func.func @transform_2(%arg0: i32) -> (i32, i32) {
    %c0_i32 = arith.constant 0 : i32
    %c0_i32_0 = arith.constant 0 : i32
    return %arg0, %c0_i32 : i32, i32
  }
  func.func @transform_3(%arg0: i32) -> (i32, i32) {
    %c0_i32 = arith.constant 0 : i32
    %c0_i32_0 = arith.constant 0 : i32
    return %arg0, %c0_i32 : i32, i32
  }
  func.func @transform_4(%arg0: i32) -> (i32, i32) {
    %c0_i32 = arith.constant 0 : i32
    %c0_i32_0 = arith.constant 0 : i32
    return %arg0, %c0_i32 : i32, i32
  }
}

</mosaic_0001>

<bundles_post_ra>
// kernel: tpu_custom_call.1
= control target key start
LH: loop header
LB: loop body
LE: loop exit
PB: predicated region body
PF: predicated region fallthrough
CT: control target
= control target key end

     0   :  { %9 = vsyncpa [#allocation3], 0  ;;  %s346_s0 = inlined_call_operand.vmem [shape: f32[8,32], index: 0, kind: input, shape index: {}]   ;;  %s347_s1 = inlined_call_operand.hbm [shape: f32[16,32], index: 1, kind: input, shape index: {}]   ;;  %s348_s2 = inlined_call_operand.hbm [shape: f32[8,16], index: 2, kind: input, shape index: {}]   ;;  %s349_s3 = inlined_call_operand.vmem [shape: s32[8,1], index: 3, kind: input, shape index: {}]   ;;  %s350_s4 = inlined_call_operand.vmem [shape: f32[8,1], index: 4, kind: output, shape index: {}]  }
   0x1   :  { %10 = vsyncpa [#allocation5], 0  ;;  %s287_s15 = smov [#allocation2]  }
   0x2   :  { %s18_s16 = sshll.u32 %s287_s15, 4  ;;  %s19_s16 = int_to_ptr.vmem [resolvable:$true] %s18_s16 }
   0x3   :  { %s251_s17 = scalar_lea.vmem %s19_s16, 256  ;;  %p256_p1 = scmp.lt.s32.totalorder %s19_s16, %s19_s16 }
   0x4   :  { %p252_p0 = scmp.ne.s32.totalorder %s19_s16, %s251_s17  ;;  %p257_p2 = scmp.lt.s32.totalorder %s251_s17, %s251_s17 }
   0x6   :  { %p258_p3 = por %p257_p2, %p256_p1 }
   0x8   :  { %p259_p4 = pnand %p258_p3, %p252_p0 }
   0xa   :  { %262 = shalt.err (!%p259_p4)
}
   0xb   :  { %s288_s18 = smov 128   ;;  %s289_s19 = smov 8  }
   0xc   :  { %24 = dma.hbm_to_vmem [thread:$0]  %s347_s1, 256, %s19_s16, [#allocation3], %s288_s18, %s288_s18, %s289_s19  }
   0xd   :  { %s290_s22 = smov [#allocation4]  }
   0xe   :  { %s31_s23 = sshll.u32 %s290_s22, 4  ;;  %s32_s23 = int_to_ptr.vmem [resolvable:$true] %s31_s23 }
   0xf   :  { %s271_s24 = scalar_lea.vmem %s32_s23, 128  ;;  %p276_p6 = scmp.lt.s32.totalorder %s32_s23, %s32_s23 }
  0x10   :  { %p272_p5 = scmp.ne.s32.totalorder %s32_s23, %s271_s24  ;;  %p277_p7 = scmp.lt.s32.totalorder %s271_s24, %s271_s24 }
  0x12   :  { %p278_p8 = por %p277_p7, %p276_p6 }
  0x14   :  { %p279_p9 = pnand %p278_p8, %p272_p5 }
  0x16   :  { %282 = shalt.err (!%p279_p9)
}
  0x17   :  { %34 = dma.hbm_to_vmem [thread:$0]  %s348_s2, 128, %s32_s23, [#allocation5]  }
  0x18   :  { %283 = dma.done.wait [#allocation3], 256  }
  0x19   :  { %284 = vsyncadd [#allocation3], 4294967040 }
  0x1a   :  { %285 = dma.done.wait [#allocation5], 128  }
  0x1b   :  { %286 = vsyncadd [#allocation5], 4294967168  ;;  %v45_v0 = vld [vmem:[#allocation2 + $0x8] sm:$0xff]  ;;  %vm49_vm0 = vcmask 261120   ;;  %v44_v1 = vld [vmem:[#allocation2] sm:$0xff]  ;;  %v291_v9 = vmov 0.0   ;;  %v152_v24 = vlaneseq }
  0x1c   :  { %v43_v2 = vld [vmem:[%s346_s0] sm:$0xff]  ;;  %v57_v3 = vmul.f32 %v45_v0, %v45_v0  ;;  %v56_v4 = vmul.f32 %v44_v1, %v44_v1  ;;  %213 = vmatprep.subr.mxu0 %v291_v9  ;;  %vm292_vm1 = vmmov 0   ;;  %v293_v11 = vmov 0   ;;  %v46_v38 = vld [vmem:[#allocation4] sm:$0xff] }
  0x1d   :  { %v48_v5 = vmul.f32 %v43_v2, %v43_v2  ;;  %217 = vmatprep.mubr.msk.f32.mxu0 %vm292_vm1, %v291_v9  ;;  %v47_v10 = vld [vmem:[%s349_s3] sm:$0xff]  ;;  %227 = vset.pattern.permute.xlu1 %v293_v11  ;;  %v153_v25 = vand.u32 127, %v152_v24  ;;  %vm162_vm3 = vcmask 130048   ;;  %vm198_vm4 = vcmask 7168  }
  0x1e   :  { %v61_v6 = vsel %vm49_vm0, %v57_v3, 0.0  ;;  %v58_v8 = vsel %vm49_vm0, %v56_v4, 0.0  ;;  %228 = vset.pattern.permute.xlu0 %v293_v11  ;;  %v180_v39 = vsel %vm162_vm3, %v46_v38, -inf }
  0x1f   :  { %v50_v7 = vsel %vm49_vm0, %v48_v5, 0.0  ;;  %62 = vadd.xlane.f32.xlu0 %v61_v6 }
  0x20   :  { %51 = vadd.xlane.f32.xlu1 %v50_v7 }
  0x23   :  { %59 = vadd.xlane.f32.xlu0 %v58_v8 }
  0x31   :  { %155 = vperm.xlu1 %227, %v47_v10  }
  0xa8   :  { %v63_v12 = vpop.xlane.xlu0 %62 }
  0xa9   :  { %v52_v13 = vpop.xlane.xlu1 %51  ;;  %v65_v14 = vmax.f32 %v63_v12, 1e-24 }
  0xaa   :  { %v53_v15 = vmax.f32 %v52_v13, 1e-24 }
  0xab   :  { %229 = vrsqrt.f32 %v65_v14 }
  0xac   :  { %v60_v16 = vpop.xlane.xlu0 %59  ;;  %231 = vrsqrt.f32 %v53_v15 }
  0xad   :  { %v64_v17 = vmax.f32 %v60_v16, 1e-24  ;;  %v156_v26 = vpop.permute.xlu1 %155 }
  0xae   :  { %vm157_vm2 = vcmp.eq.s32.totalorder %v153_v25, %v156_v26 }
  0xaf   :  { %233 = vrsqrt.f32 %v64_v17  ;;  %v209_v31 = vsel %vm157_vm2, 1.0, %v291_v9 }
  0xb0   :  { %v192_v50 = vmul.f32 %v209_v31, %v46_v38 }
  0xb2   :  { %v193_v51 = vsel %vm162_vm3, %v192_v50, 0.0 }
  0xb8   :  { %v230_v18 = vpop.eup %229 }
  0xb9   :  { %v69_v19 = vmul.f32 %v230_v18, %v45_v0  ;;  %v232_v20 = vpop.eup %231 }
  0xba   :  { %v55_v23 = vmul.f32 %v232_v20, %v43_v2 }
  0xbb   :  { %214 = vmatpush3.xpose.msk.msra.mxu0 %vm49_vm0, %v69_v19 }
  0xbc   :  { %v234_v21 = vpop.eup %233  ;;  %215 = vmatprep.subr.mxu0 %v291_v9 }
  0xbd   :  { %v68_v22 = vmul.f32 %v234_v21, %v44_v1 }
  0xbf   :  { %216 = vmatpush3.xpose.msk.msra.mxu0 %vm49_vm0, %v68_v22 }
  0xc2   :  { %218 = vmatmul.mubr.msk.f32.vlgmr.msra.gmra.mxu0 %vm49_vm0, %v55_v23 }
 0x182   :  { %v145_v27 = vpop.f32.mrf.mxu0 }
 0x183   :  { %v149_v28 = vmul.f32 2.0, %v145_v27 }
 0x184   :  { %v219_v29 = vpop.f32.mrf.mxu0 }
 0x185   :  { %v150_v30 = vsub.f32 2.0, %v149_v28 }
 0x187   :  { %v151_v32 = vmax.f32 %v150_v30, 0.0 }
 0x189   :  { %v160_v33 = vadd.f32 %v209_v31, %v151_v32 }
 0x18b   :  { %v175_v34 = vmul.f32 %v209_v31, %v160_v33  ;;  %v161_v35 = vsub.f32 0.0, %v160_v33 }
 0x18d   :  { %v176_v36 = vsel %vm162_vm3, %v175_v34, 0.0  ;;  %v163_v37 = vsel %vm162_vm3, %v161_v35, -inf }
 0x18e   :  { %177 = vadd.xlane.f32.xlu1 %v176_v36  ;;  %164 = vmax.xlane.f32.xlu0 %v163_v37 }
 0x192   :  { %181 = vmax.xlane.f32.xlu0 %v180_v39 }
 0x217   :  { %v165_v40 = vpop.xlane.xlu0 %164  ;;  %v178_v60 = vpop.xlane.xlu1 %177 }
 0x218   :  { %v166_v41 = vsub.f32 %v161_v35, %v165_v40 }
 0x21a   :  { %v167_v42 = vmul.f32 1.442695, %v166_v41 }
 0x21b   :  { %v182_v43 = vpop.xlane.xlu0 %181 }
 0x21c   :  { %235 = vpow2.f32 %v167_v42  ;;  %v183_v44 = vsub.f32 %v46_v38, %v182_v43 }
 0x21e   :  { %v184_v45 = vmul.f32 1.442695, %v183_v44 }
 0x220   :  { %237 = vpow2.f32 %v184_v45 }
 0x229   :  { %v236_v46 = vpop.eup %235 }
 0x22a   :  { %v169_v47 = vsel %vm162_vm3, %v236_v46, 0.0 }
 0x22b   :  { %170 = vadd.xlane.f32.xlu0 %v169_v47 }
 0x22d   :  { %v238_v48 = vpop.eup %237 }
 0x22e   :  { %v186_v49 = vsel %vm162_vm3, %v238_v48, 0.0 }
 0x22f   :  { %187 = vadd.xlane.f32.xlu0 %v186_v49 }
 0x233   :  { %194 = vadd.xlane.f32.xlu0 %v193_v51 }
 0x2b4   :  { %v171_v52 = vpop.xlane.xlu0 %170 }
 0x2b5   :  { %239 = vlog2.f32 %v171_v52 }
 0x2b8   :  { %v188_v53 = vpop.xlane.xlu0 %187 }
 0x2b9   :  { %241 = vlog2.f32 %v188_v53 }
 0x2bc   :  { %v195_v61 = vpop.xlane.xlu0 %194 }
 0x2c2   :  { %v240_v54 = vpop.eup %239 }
 0x2c3   :  { %v173_v55 = vmul.f32 0.6931472, %v240_v54 }
 0x2c5   :  { %v174_v57 = vadd.f32 %v173_v55, %v165_v40 }
 0x2c6   :  { %v242_v56 = vpop.eup %241 }
 0x2c7   :  { %v190_v58 = vmul.f32 0.6931472, %v242_v56  ;;  %v179_v62 = vadd.f32 %v178_v60, %v174_v57 }
 0x2c9   :  { %v191_v59 = vadd.f32 %v190_v58, %v182_v43 }
 0x2cb   :  { %v196_v63 = vsub.f32 %v191_v59, %v195_v61 }
 0x2cd   :  { %v197_v0 = vadd.f32 %v196_v63, %v179_v62 }
 0x2cf   :  { %199 = vst.msk [vmem:[%s350_s4] sm:$0xff] %vm198_vm4, %v197_v0 }
 0x2d0   :  { %204 = vsyncpa [#allocation3], 1 }
 0x2d1   :  { %205 = vsyncpa [#allocation5], 1 }

</bundles_post_ra>
